<compile_context>
chip_gen: v5e
topology: v5e:2x2
jax: 0.10.0
libtpu: 0.0.40
codegen_flags: <defaults>
</compile_context>

<pallas_src>
import functools
import math

import jax
import jax.numpy as jnp
from jax.experimental import pallas as pl
from jax.experimental.pallas import tpu as pltpu

N_EMBED = 192
HIDDEN = 4 * N_EMBED
DROPOUT_P = 0.2


def _round_up(n: int, m: int) -> int:
    return ((n + m - 1) // m) * m


def _ffn_kernel(x_ref, w1_ref, b1_ref, w2_ref, b2_ref, *rest, training: bool):
    # x_ref: (TM, C) f32, w1: (C, 4C) bf16, b1: (1, 4C) f32,
    # w2: (4C, C) bf16, b2: (1, C) f32, [mask: (TM, C) f32], o: (TM, C) f32
    if training:
        mask_ref, o_ref = rest
    else:
        (o_ref,) = rest

    # bf16 MXU operands, f32 accumulation.
    x = x_ref[...].astype(jnp.bfloat16)
    h = jnp.dot(x, w1_ref[...], preferred_element_type=jnp.float32) + b1_ref[...]
    h = jnp.maximum(h, 0.0)                                   # ReLU (f32)
    y = jnp.dot(h.astype(jnp.bfloat16), w2_ref[...],
                preferred_element_type=jnp.float32) + b2_ref[...]

    if training:
        # mask is pre-scaled by 1/(1-p) in the wrapper (inverted dropout).
        y = y * mask_ref[...]

    o_ref[...] = y.astype(o_ref.dtype)


def feed_forward(x, w1, b1, w2, b2, *, seed: int = 0, training: bool = False,
                 tile_m: int = 512):
    """x: (B, T, C) float32 -> (B, T, C) float32."""
    B, T, C = x.shape
    assert C == N_EMBED
    M = B * T

    # Keep tile a multiple of 8 (sublanes) and try to have >= 2 grid steps
    # (so both v7x TensorCores get work); pad M up to a tile multiple.
    tile_m = max(8, min(tile_m, _round_up(max(M // 2, 1), 8)))
    M_pad = _round_up(M, tile_m)

    x2d = x.reshape(M, C).astype(jnp.float32)
    if M_pad != M:
        x2d = jnp.pad(x2d, ((0, M_pad - M), (0, 0)))

    w1b = w1.astype(jnp.bfloat16)
    w2b = w2.astype(jnp.bfloat16)
    b1_2d = b1.reshape(1, HIDDEN).astype(jnp.float32)
    b2_2d = b2.reshape(1, C).astype(jnp.float32)

    inputs = [x2d, w1b, b1_2d, w2b, b2_2d]
    in_specs = [
        pl.BlockSpec((tile_m, C), lambda i: (i, 0)),   # x row-tile
        pl.BlockSpec((C, HIDDEN), lambda i: (0, 0)),   # w1 (resident, bf16)
        pl.BlockSpec((1, HIDDEN), lambda i: (0, 0)),   # b1
        pl.BlockSpec((HIDDEN, C), lambda i: (0, 0)),   # w2 (resident, bf16)
        pl.BlockSpec((1, C), lambda i: (0, 0)),        # b2
    ]

    bytes_accessed = (2 * M_pad * C * 4                # x + out (f32)
                      + 2 * C * HIDDEN * 2             # bf16 weights
                      + (HIDDEN + C) * 4)              # biases

    if training:
        # Grid/tile-invariant dropout mask generated on the host side with
        # jax.random (the TPU hardware PRNG has no interpret-mode lowering);
        # pre-scaled so the kernel only does one fused multiply.
        key = jax.random.PRNGKey(seed)
        keep = jax.random.bernoulli(key, 1.0 - DROPOUT_P, (M, C))
        mask = keep.astype(jnp.float32) * (1.0 / (1.0 - DROPOUT_P))
        if M_pad != M:
            mask = jnp.pad(mask, ((0, M_pad - M), (0, 0)))
        inputs.append(mask)
        in_specs.append(pl.BlockSpec((tile_m, C), lambda i: (i, 0)))
        bytes_accessed += M_pad * C * 4

    kernel = functools.partial(_ffn_kernel, training=training)

    out = pl.pallas_call(
        kernel,
        out_shape=jax.ShapeDtypeStruct((M_pad, C), jnp.float32),
        grid_spec=pltpu.PrefetchScalarGridSpec(
            num_scalar_prefetch=0,
            grid=(M_pad // tile_m,),
            in_specs=in_specs,
            out_specs=pl.BlockSpec((tile_m, C), lambda i: (i, 0)),
        ),
        compiler_params=pltpu.CompilerParams(
            dimension_semantics=("parallel",)),
        cost_estimate=pl.CostEstimate(
            flops=2 * M_pad * (C * HIDDEN + HIDDEN * C),
            transcendentals=0,
            bytes_accessed=bytes_accessed),
    )(*inputs)

    if M_pad != M:
        out = out[:M]
    return out.reshape(B, T, C)


def _init_params(key):
    """Deterministic init mimicking torch.nn.Linear default (uniform +-1/sqrt(fan_in))."""
    k1, k2, k3, k4 = jax.random.split(key, 4)
    lim1 = 1.0 / math.sqrt(N_EMBED)
    lim2 = 1.0 / math.sqrt(HIDDEN)
    w1 = jax.random.uniform(k1, (N_EMBED, HIDDEN), jnp.float32, -lim1, lim1)
    b1 = jax.random.uniform(k2, (HIDDEN,), jnp.float32, -lim1, lim1)
    w2 = jax.random.uniform(k3, (HIDDEN, N_EMBED), jnp.float32, -lim2, lim2)
    b2 = jax.random.uniform(k4, (N_EMBED,), jnp.float32, -lim2, lim2)
    return w1, b1, w2, b2


if __name__ == "__main__":
    key = jax.random.PRNGKey(0)
    kp, kx = jax.random.split(key)
    w1, b1, w2, b2 = _init_params(kp)

    B, T = 2, 8  # batch=2, seq=8, n_embed=192
    x = jax.random.normal(kx, (B, T, N_EMBED), jnp.float32)

    # eval mode (dropout = identity): check against a matching-precision reference
    y_eval = jax.block_until_ready(feed_forward(x, w1, b1, w2, b2, training=False))
    xb = x.reshape(-1, N_EMBED).astype(jnp.bfloat16)
    h_ref = jnp.maximum(
        jnp.dot(xb, w1.astype(jnp.bfloat16),
                preferred_element_type=jnp.float32) + b1, 0.0)
    y_ref = (jnp.dot(h_ref.astype(jnp.bfloat16), w2.astype(jnp.bfloat16),
                     preferred_element_type=jnp.float32) + b2).reshape(B, T, N_EMBED)
    assert jnp.allclose(y_eval, y_ref, atol=2e-2, rtol=2e-2), "mismatch vs reference"

    # training mode (dropout active)
    y_train = jax.block_until_ready(
        feed_forward(x, w1, b1, w2, b2, seed=123, training=True))
    assert y_train.shape == (B, T, N_EMBED)
    assert bool(jnp.all(jnp.isfinite(y_train)))

    print("KERNEL_OK")
</pallas_src>

<mosaic_0001>
module attributes {stable_mosaic.version = 11 : i64} {
  func.func @_ffn_kernel(%arg0: i32, %arg1: memref<8x192xf32, #tpu.memory_space<vmem>>, %arg2: memref<192x768xbf16, #tpu.memory_space<vmem>>, %arg3: memref<1x768xf32, #tpu.memory_space<vmem>>, %arg4: memref<768x192xbf16, #tpu.memory_space<vmem>>, %arg5: memref<1x192xf32, #tpu.memory_space<vmem>>, %arg6: memref<8x192xf32, #tpu.memory_space<vmem>>) attributes {dimension_semantics = [#tpu.dimension_semantics<parallel>], iteration_bounds = array<i64: 2>, scalar_prefetch = 0 : i64, scratch_operands = 0 : i64, tpu.core_type = #tpu.core_type<tc>, window_params = [{transform_indices = @transform_0, window_bounds = array<i64: 8, 192>}, {pipeline_mode = #tpu.pipeline_mode<synchronous>, transform_indices = @transform_1, window_bounds = array<i64: 192, 768>}, {pipeline_mode = #tpu.pipeline_mode<synchronous>, transform_indices = @transform_2, window_bounds = array<i64: 1, 768>}, {pipeline_mode = #tpu.pipeline_mode<synchronous>, transform_indices = @transform_3, window_bounds = array<i64: 768, 192>}, {pipeline_mode = #tpu.pipeline_mode<synchronous>, transform_indices = @transform_4, window_bounds = array<i64: 1, 192>}, {transform_indices = @transform_5, window_bounds = array<i64: 8, 192>}]} {
    %c0 = arith.constant 0 : index
    %c0_0 = arith.constant 0 : index
    %0 = vector.load %arg1[%c0, %c0_0] : memref<8x192xf32, #tpu.memory_space<vmem>>, vector<8x192xf32>
    %1 = arith.truncf %0 : vector<8x192xf32> to vector<8x192xbf16>
    %c0_1 = arith.constant 0 : index
    %c0_2 = arith.constant 0 : index
    %2 = vector.load %arg2[%c0_1, %c0_2] : memref<192x768xbf16, #tpu.memory_space<vmem>>, vector<192x768xbf16>
    %cst = arith.constant dense<0.000000e+00> : vector<8x768xf32>
    %3 = tpu.matmul %1, %2, %cst {dimension_numbers = #tpu.dot_dimension_numbers<[1], [0], [0], [1], [0, 0, 1, 1], [], []>} : vector<8x192xbf16>, vector<192x768xbf16>, vector<8x768xf32> -> vector<8x768xf32>
    %c0_3 = arith.constant 0 : index
    %c0_4 = arith.constant 0 : index
    %4 = vector.load %arg3[%c0_3, %c0_4] : memref<1x768xf32, #tpu.memory_space<vmem>>, vector<1x768xf32>
    %5 = vector.broadcast %4 : vector<1x768xf32> to vector<8x768xf32>
    %6 = arith.addf %3, %5 : vector<8x768xf32>
    %cst_5 = arith.constant 0.000000e+00 : f32
    %7 = vector.broadcast %cst_5 : f32 to vector<8x768xf32>
    %8 = arith.maximumf %6, %7 : vector<8x768xf32>
    %9 = arith.truncf %8 : vector<8x768xf32> to vector<8x768xbf16>
    %c0_6 = arith.constant 0 : index
    %c0_7 = arith.constant 0 : index
    %10 = vector.load %arg4[%c0_6, %c0_7] : memref<768x192xbf16, #tpu.memory_space<vmem>>, vector<768x192xbf16>
    %cst_8 = arith.constant dense<0.000000e+00> : vector<8x192xf32>
    %11 = tpu.matmul %9, %10, %cst_8 {dimension_numbers = #tpu.dot_dimension_numbers<[1], [0], [0], [1], [0, 0, 1, 1], [], []>} : vector<8x768xbf16>, vector<768x192xbf16>, vector<8x192xf32> -> vector<8x192xf32>
    %c0_9 = arith.constant 0 : index
    %c0_10 = arith.constant 0 : index
    %12 = vector.load %arg5[%c0_9, %c0_10] : memref<1x192xf32, #tpu.memory_space<vmem>>, vector<1x192xf32>
    %13 = vector.broadcast %12 : vector<1x192xf32> to vector<8x192xf32>
    %14 = arith.addf %11, %13 : vector<8x192xf32>
    %c0_11 = arith.constant 0 : index
    %c0_12 = arith.constant 0 : index
    %15 = vector.load %arg6[%c0_11, %c0_12] : memref<8x192xf32, #tpu.memory_space<vmem>>, vector<8x192xf32>
    tpu.vector_store %arg6[%c0_11, %c0_12], %14 {strides = array<i32>} : memref<8x192xf32, #tpu.memory_space<vmem>>, vector<8x192xf32>,
    return
  }
  func.func @transform_0(%arg0: i32) -> (i32, i32) {
    %c0_i32 = arith.constant 0 : i32
    %c0_i32_0 = arith.constant 0 : i32
    return %arg0, %c0_i32 : i32, i32
  }
  func.func @transform_1(%arg0: i32) -> (i32, i32) {
    %c0_i32 = arith.constant 0 : i32
    %c0_i32_0 = arith.constant 0 : i32
    %c0_i32_1 = arith.constant 0 : i32
    return %c0_i32, %c0_i32_0 : i32, i32
  }
  func.func @transform_2(%arg0: i32) -> (i32, i32) {
    %c0_i32 = arith.constant 0 : i32
    %c0_i32_0 = arith.constant 0 : i32
    %c0_i32_1 = arith.constant 0 : i32
    return %c0_i32, %c0_i32_0 : i32, i32
  }
  func.func @transform_3(%arg0: i32) -> (i32, i32) {
    %c0_i32 = arith.constant 0 : i32
    %c0_i32_0 = arith.constant 0 : i32
    %c0_i32_1 = arith.constant 0 : i32
    return %c0_i32, %c0_i32_0 : i32, i32
  }
  func.func @transform_4(%arg0: i32) -> (i32, i32) {
    %c0_i32 = arith.constant 0 : i32
    %c0_i32_0 = arith.constant 0 : i32
    %c0_i32_1 = arith.constant 0 : i32
    return %c0_i32, %c0_i32_0 : i32, i32
  }
  func.func @transform_5(%arg0: i32) -> (i32, i32) {
    %c0_i32 = arith.constant 0 : i32
    %c0_i32_0 = arith.constant 0 : i32
    return %arg0, %c0_i32 : i32, i32
  }
}

</mosaic_0001>

<bundles_post_ra>
// kernel: tpu_custom_call.1
= control target key start
LH: loop header
LB: loop body
LE: loop exit
PB: predicated region body
PF: predicated region fallthrough
CT: control target
= control target key end

     0   :  { %10 = vsyncpa [#allocation3], 0  ;;  %s3809_s0 = inlined_call_operand.vmem [shape: f32[16,192], index: 0, kind: input, shape index: {}]   ;;  %s3810_s1 = inlined_call_operand.vmem [shape: bf16[192,768], index: 1, kind: input, shape index: {}]   ;;  %s3811_s2 = inlined_call_operand.vmem [shape: f32[1,768], index: 2, kind: input, shape index: {}]   ;;  %s3812_s3 = inlined_call_operand.vmem [shape: bf16[768,192], index: 3, kind: input, shape index: {}]   ;;  %s3813_s4 = inlined_call_operand.vmem [shape: f32[1,192], index: 4, kind: input, shape index: {}]   ;;  %s3814_s5 = inlined_call_operand.hbm [shape: f32[16,192], index: 5, kind: output, shape index: {}]  }
   0x1   :  { %12 = vsyncpa [#allocation3 + $0x1], 0  ;;  %s2655_s18 = smov 0   ;;  %s2657_s19 = smov 0  }
   0x2   :  { %s2659_s20 = smov 0   ;;  %s2661_s21 = smov 0  }
   0x3 LB: > { %s2676_s22 = sadd.s32 4294967295, %s2623_s21   ;;  %s1662_s23 = sadd.s32 4294967294, %s2623_s21   ;;  %s2623_s21 = sphi %s2661_s21, %s3820_s21   ;;  %s2619_s20 = sphi %s2659_s20, %s3819_s20   ;;  %s2615_s19 = sphi %s2657_s19, %s3818_s19   ;;  %s2611_s18 = sphi %s2655_s18, %s3817_s18  }
   0x4   : > { %s2680_s24 = sadd.s32 1, %s2623_s21   ;;  %s135_s25 = sadd.s32 1, %s2619_s20 }
   0x5   : > { %s132_s26 = ssub.s32 %s2623_s21, %s2680_s24  ;;  %p145_p0 = scmp.ne.s32.totalorder %s2619_s20, %s2615_s19 }
   0x6   : > { %p133_p1 = scmp.eq.s32.totalorder %s132_s26, 0  ;;  %p146_p2 = scmp.eq.s32.totalorder %s2676_s22, 1 }
   0x7   : > { %p151_p3 = scmp.ne.s32.totalorder %s2615_s19, %s2611_s18  ;;  %p152_p4 = scmp.eq.s32.totalorder %s1662_s23, 1 }
   0x8   : > { %s2691_s27 = scalar_select %p133_p1, %s2619_s20, %s135_s25  }
   0x9   : > { %p2693_p5 = por %p146_p2, %p145_p0  ;;  %p2697_p6 = por %p152_p4, %p151_p3 }
   0xa   : > { %p1665_p7 = scmp.ge.s32.totalorder %s2623_s21, 1  ;;  %p190_p8 = scmp.lt.s32.totalorder %s2623_s21, 3 }
   0xc   : > { %p191_p9 = pnand %p1665_p7, %p190_p8 }
   0xd   : > { %p218_p10 = scmp.lt.s32.totalorder (!%p191_p9), %s2676_s22, 1  ;;  %s215_s15 = sand.u32 (!%p191_p9), 1, %s2615_s19  }
   0xe   : > { %194 = sbr.rel (%p191_p9) target bundleno = 401 (0x191), region = 40  ;;  %s1666_s16 = sshll.u32 (!%p191_p9), %s215_s15, 4 }
   0xf   : > { %s217_s17 = scalar_lea.vmem (!%p191_p9), [#allocation2], %s1666_s16  ;;  %s2521_s23 = sshll.u32 (!%p191_p9), %s2676_s22, 4 }
  0x10   : > { %s1600_s7 = sshll.u32 (!%p191_p9), %s217_s17, 4  ;;  %s1601_s7 = int_to_ptr.vmem [resolvable:$true] %s1600_s7 }
  0x13   : > { %v1839_v0 = vld [vmem:[%s3810_s1 + $0x150] sm:$0xf]  ;;  %v2398_v1 = vld [vmem:[%s3810_s1 + $0x164] sm:$0xf0]  ;;  %v2395_v5 = vld [vmem:[%s3810_s1 + $0x154] sm:$0xf] }
  0x14   : > { %v1935_v2 = vld [vmem:[%s3810_s1 + $0x210] sm:$0xf]  ;;  %v1840_v3 = vor.u32 %v2398_v1, %v1839_v0  ;;  %v2422_v4 = vld [vmem:[%s3810_s1 + $0x224] sm:$0xf0]  ;;  %v1841_v6 = vld [vmem:[%s3810_s1 + $0x168] sm:$0xf0] }
  0x15   : > { %v1936_v7 = vor.u32 %v2422_v4, %v1935_v2  ;;  %v1844_v8 = vor.u32 %v2395_v5, %v1841_v6  ;;  %v2419_v9 = vld [vmem:[%s3810_s1 + $0x214] sm:$0xf]  ;;  %v1937_v10 = vld [vmem:[%s3810_s1 + $0x228] sm:$0xf0]  ;;  %v1815_v11 = vld [vmem:[%s3810_s1 + $0x120] sm:$0xf] }
  0x16   : > { %678 = vmatpush.bf16.msra.mxu0 %v1840_v3  ;;  %v1940_v12 = vor.u32 %v2419_v9, %v1937_v10  ;;  %v2392_v13 = vld [vmem:[%s3810_s1 + $0x134] sm:$0xf0]  ;;  %v1911_v14 = vld [vmem:[%s3810_s1 + $0x1e0] sm:$0xf]  ;;  %v2389_v18 = vld [vmem:[%s3810_s1 + $0x124] sm:$0xf] }
  0x17   : > { %v2416_v15 = vld [vmem:[%s3810_s1 + $0x1f4] sm:$0xf0]  ;;  %695 = vmatpush.bf16.msra.mxu1 %v1936_v7  ;;  %704 = vmatpush.bf16.msra.mxu2 %v1844_v8  ;;  %v1816_v16 = vor.u32 %v2392_v13, %v1815_v11  ;;  %v1817_v19 = vld [vmem:[%s3810_s1 + $0x138] sm:$0xf0]  ;;  %v2413_v20 = vld [vmem:[%s3810_s1 + $0x1e4] sm:$0xf] }
  0x18   : > { %v1912_v17 = vor.u32 %v2416_v15, %v1911_v14  ;;  %721 = vmatpush.bf16.msra.mxu3 %v1940_v12  ;;  %v1820_v21 = vor.u32 %v2389_v18, %v1817_v19  ;;  %v1913_v22 = vld [vmem:[%s3810_s1 + $0x1f8] sm:$0xf0]  ;;  %v1791_v23 = vld [vmem:[%s3810_s1 + $0xf0] sm:$0xf]  ;;  %v2386_v24 = vld [vmem:[%s3810_s1 + $0x104] sm:$0xf0] }
  0x19   : > { %v1916_v25 = vor.u32 %v2413_v20, %v1913_v22  ;;  %v1887_v26 = vld [vmem:[%s3810_s1 + $0x1b0] sm:$0xf]  ;;  %v2410_v27 = vld [vmem:[%s3810_s1 + $0x1c4] sm:$0xf0]  ;;  %v2383_v28 = vld [vmem:[%s3810_s1 + $0xf4] sm:$0xf]  ;;  %v1792_v29 = vor.u32 %v2386_v24, %v1791_v23 }
  0x1a   : > { %679 = vmatpush.bf16.msra.mxu0 %v1816_v16  ;;  %v1793_v30 = vld [vmem:[%s3810_s1 + $0x108] sm:$0xf0]  ;;  %v2407_v31 = vld [vmem:[%s3810_s1 + $0x1b4] sm:$0xf]  ;;  %v1888_v33 = vor.u32 %v2410_v27, %v1887_v26  ;;  %v1767_v35 = vld [vmem:[%s3810_s1 + $0xc0] sm:$0xf] }
  0x1b   : > { %v1889_v32 = vld [vmem:[%s3810_s1 + $0x1c8] sm:$0xf0]  ;;  %696 = vmatpush.bf16.msra.mxu1 %v1912_v17  ;;  %705 = vmatpush.bf16.msra.mxu2 %v1820_v21  ;;  %v1796_v34 = vor.u32 %v2383_v28, %v1793_v30  ;;  %v2380_v36 = vld [vmem:[%s3810_s1 + $0xd4] sm:$0xf0]  ;;  %v1863_v37 = vld [vmem:[%s3810_s1 + $0x180] sm:$0xf] }
  0x1c   : > { %722 = vmatpush.bf16.msra.mxu3 %v1916_v25  ;;  %v1892_v38 = vor.u32 %v2407_v31, %v1889_v32  ;;  %v2404_v39 = vld [vmem:[%s3810_s1 + $0x194] sm:$0xf0]  ;;  %v2377_v40 = vld [vmem:[%s3810_s1 + $0xc4] sm:$0xf]  ;;  %v1769_v41 = vld [vmem:[%s3810_s1 + $0xd8] sm:$0xf0]  ;;  %v1768_v45 = vor.u32 %v2380_v36, %v1767_v35 }
  0x1d   : > { %v2401_v42 = vld [vmem:[%s3810_s1 + $0x184] sm:$0xf]  ;;  %v1865_v43 = vld [vmem:[%s3810_s1 + $0x198] sm:$0xf0]  ;;  %v1847_v44 = vld [vmem:[%s3810_s1 + $0x158] sm:$0xf]  ;;  %v1864_v49 = vor.u32 %v2404_v39, %v1863_v37  ;;  %v1772_v50 = vor.u32 %v2377_v40, %v1769_v41 }
  0x1e   : > { %680 = vmatpush.bf16.msra.mxu0 %v1792_v29  ;;  %v2399_v46 = vld [vmem:[%s3810_s1 + $0x16c] sm:$0xf0]  ;;  %v1943_v47 = vld [vmem:[%s3810_s1 + $0x218] sm:$0xf]  ;;  %v2374_v52 = vld [vmem:[%s3810_s1 + $0xa4] sm:$0xf0]  ;;  %v1868_v53 = vor.u32 %v2401_v42, %v1865_v43 }
  0x1f   : > { %v2423_v48 = vld [vmem:[%s3810_s1 + $0x22c] sm:$0xf0]  ;;  %697 = vmatpush.bf16.msra.mxu1 %v1888_v33  ;;  %706 = vmatpush.bf16.msra.mxu2 %v1796_v34  ;;  %v1848_v54 = vor.u32 %v2399_v46, %v1847_v44  ;;  %v2371_v55 = vld [vmem:[%s3810_s1 + $0x94] sm:$0xf]  ;;  %v1745_v56 = vld [vmem:[%s3810_s1 + $0xa8] sm:$0xf0] }
  0x20   : > { %v1743_v51 = vld [vmem:[%s3810_s1 + $0x90] sm:$0xf]  ;;  %723 = vmatpush.bf16.msra.mxu3 %v1892_v38  ;;  %v1944_v57 = vor.u32 %v2423_v48, %v1943_v47  ;;  %v1823_v58 = vld [vmem:[%s3810_s1 + $0x128] sm:$0xf]  ;;  %v2393_v59 = vld [vmem:[%s3810_s1 + $0x13c] sm:$0xf0]  ;;  %v1748_v63 = vor.u32 %v2371_v55, %v1745_v56 }
  0x21   : > { %v1744_v60 = vor.u32 %v2374_v52, %v1743_v51  ;;  %v1919_v61 = vld [vmem:[%s3810_s1 + $0x1e8] sm:$0xf]  ;;  %v2417_v62 = vld [vmem:[%s3810_s1 + $0x1fc] sm:$0xf0]  ;;  %v2368_v1 = vld [vmem:[%s3810_s1 + $0x74] sm:$0xf0]  ;;  %v1824_v2 = vor.u32 %v2393_v59, %v1823_v58 }
  0x22   : > { %681 = vmatpush.bf16.msra.mxu0 %v1768_v45  ;;  %v1719_v0 = vld [vmem:[%s3810_s1 + $0x60] sm:$0xf]  ;;  %v2365_v3 = vld [vmem:[%s3810_s1 + $0x64] sm:$0xf]  ;;  %v1721_v4 = vld [vmem:[%s3810_s1 + $0x78] sm:$0xf0]  ;;  %v1920_v6 = vor.u32 %v2417_v62, %v1919_v61 }
  0x23   : > { %698 = vmatpush.bf16.msra.mxu1 %v1864_v49  ;;  %707 = vmatpush.bf16.msra.mxu2 %v1772_v50  ;;  %v1799_v5 = vld [vmem:[%s3810_s1 + $0xf8] sm:$0xf]  ;;  %v2387_v7 = vld [vmem:[%s3810_s1 + $0x10c] sm:$0xf0]  ;;  %v1720_v9 = vor.u32 %v2368_v1, %v1719_v0  ;;  %v2362_v12 = vld [vmem:[%s3810_s1 + $0x44] sm:$0xf0]  ;;  %v1724_v13 = vor.u32 %v2365_v3, %v1721_v4 }
  0x24   : > { %724 = vmatpush.bf16.msra.mxu3 %v1868_v53  ;;  %v1895_v8 = vld [vmem:[%s3810_s1 + $0x1b8] sm:$0xf]  ;;  %v2411_v10 = vld [vmem:[%s3810_s1 + $0x1cc] sm:$0xf0]  ;;  %v2359_v14 = vld [vmem:[%s3810_s1 + $0x34] sm:$0xf]  ;;  %v1800_v16 = vor.u32 %v2387_v7, %v1799_v5 }
  0x25   : > { %v1695_v11 = vld [vmem:[%s3810_s1 + $0x30] sm:$0xf]  ;;  %v1697_v15 = vld [vmem:[%s3810_s1 + $0x48] sm:$0xf0]  ;;  %s219_s30 = scalar_select %p218_p10, %s2676_s22, 1  ;;  %v1896_v20 = vor.u32 %v2411_v10, %v1895_v8  ;;  %vm674_vm0 = vcmask 523264  }
  0x26   : > { %682 = vmatpush.bf16.msra.mxu0 %v1744_v60  ;;  %v1775_v17 = vld [vmem:[%s3810_s1 + $0xc8] sm:$0xf]  ;;  %v2381_v18 = vld [vmem:[%s3810_s1 + $0xdc] sm:$0xf0]  ;;  %v1696_v23 = vor.u32 %v2362_v12, %v1695_v11  ;;  %v2400_v24 = vld [vmem:[%s3810_s1 + $0x174] sm:$0xf0]  ;;  %v1700_v27 = vor.u32 %v2359_v14, %v1697_v15 }
  0x27   : > { %730 = vmatpush.bf16.msrb.mxu1 %v1848_v54  ;;  %708 = vmatpush.bf16.msra.mxu2 %v1748_v63  ;;  %v1871_v19 = vld [vmem:[%s3810_s1 + $0x188] sm:$0xf]  ;;  %s2352_s12 = sshll.u32 %s219_s30, 4  ;;  %v2405_v21 = vld [vmem:[%s3810_s1 + $0x19c] sm:$0xf0]  ;;  %v1776_v32 = vor.u32 %v2381_v18, %v1775_v17  ;;  %s1598_s30 = scalar_lea.hbm %s3814_s5, %s2521_s23 }
  0x28   : > { %747 = vmatpush.bf16.msrb.mxu3 %v1944_v57  ;;  %v1855_v22 = vld [vmem:[%s3810_s1 + $0x160] sm:$0xf]  ;;  %s2891_s25 = scalar_lea.vmem %s3809_s0, %s2352_s12  ;;  %v2356_v26 = vld [vmem:[%s3810_s1 + $0x14] sm:$0xf0]  ;;  %v2353_v29 = vld [vmem:[%s3810_s1 + $0x4] sm:$0xf]  ;;  %v1872_v36 = vor.u32 %v2405_v21, %v1871_v19 }
  0x29   : > { %v1671_v25 = vld [vmem:[%s3810_s1] sm:$0xf]  ;;  %v225_v28 = vld [vmem:[%s2891_s25 + $0x8] sm:$0xff]  ;;  %v1673_v30 = vld [vmem:[%s3810_s1 + $0x18] sm:$0xf0]  ;;  %v1856_v40 = vor.u32 %v2400_v24, %v1855_v22  ;;  %s1587_s22 = scalar_lea.sflag [#allocation3], %s215_s15 }
  0x2a   : > { %683 = vmatpush.bf16.msra.mxu0 %v1720_v9  ;;  %v2909_v31 = vpack.c.bf16 %v225_v28, %v225_v28  ;;  %v1751_v33 = vld [vmem:[%s3810_s1 + $0x98] sm:$0xf]  ;;  %v2396_v34 = vld [vmem:[%s3810_s1 + $0x15c] sm:$0xf]  ;;  %v1849_v35 = vld [vmem:[%s3810_s1 + $0x170] sm:$0xf0]  ;;  %v1672_v41 = vor.u32 %v2356_v26, %v1671_v25  ;;  %v1676_v42 = vor.u32 %v2353_v29, %v1673_v30 }
  0x2b   : > { %731 = vmatpush.bf16.msrb.mxu1 %v1824_v2  ;;  %709 = vmatpush.bf16.msra.mxu2 %v1724_v13  ;;  %v2375_v37 = vld [vmem:[%s3810_s1 + $0xac] sm:$0xf0]  ;;  %v2420_v38 = vld [vmem:[%s3810_s1 + $0x21c] sm:$0xf]  ;;  %v1945_v39 = vld [vmem:[%s3810_s1 + $0x230] sm:$0xf0]  ;;  %v1852_v43 = vor.u32 %v2396_v34, %v1849_v35 }
  0x2c   : > { %748 = vmatpush.bf16.msrb.mxu3 %v1920_v6  ;;  %1957 = vmatmul.msk.bf16.vlgmr.msra.gmra.mxu1 %vm674_vm0, %v2909_v31  ;;  %v1831_v44 = vld [vmem:[%s3810_s1 + $0x130] sm:$0xf]  ;;  %v2394_v45 = vld [vmem:[%s3810_s1 + $0x144] sm:$0xf0]  ;;  %v224_v46 = vld [vmem:[%s2891_s25] sm:$0xff]  ;;  %v1752_v47 = vor.u32 %v2375_v37, %v1751_v33  ;;  %v1948_v48 = vor.u32 %v2420_v38, %v1945_v39  ;;  %s1602_s25 = sshll.u32 %s1598_s30, 4  ;;  %s1603_s25 = int_to_ptr.hbm [resolvable:$true] %s1602_s25 }
  0x2d   : > { %1958 = vmatmul.msk.bf16.vlgmr.msra.gmra.mxu3 %vm674_vm0, %v2909_v31  ;;  %v1727_v49 = vld [vmem:[%s3810_s1 + $0x68] sm:$0xf]  ;;  %v2390_v50 = vld [vmem:[%s3810_s1 + $0x12c] sm:$0xf]  ;;  %v1825_v51 = vld [vmem:[%s3810_s1 + $0x140] sm:$0xf0]  ;;  %v1832_v55 = vor.u32 %v2394_v45, %v1831_v44  ;;  %v2958_v56 = vpack.c.bf16 %v224_v46, %v224_v46 }
  0x2e   : > { %684 = vmatpush.bf16.msra.mxu0 %v1696_v23  ;;  %v2369_v52 = vld [vmem:[%s3810_s1 + $0x7c] sm:$0xf0]  ;;  %v2414_v53 = vld [vmem:[%s3810_s1 + $0x1ec] sm:$0xf]  ;;  %v1921_v54 = vld [vmem:[%s3810_s1 + $0x200] sm:$0xf0]  ;;  %v1828_v57 = vor.u32 %v2390_v50, %v1825_v51 }
  0x2f   : > { %732 = vmatpush.bf16.msrb.mxu1 %v1800_v16  ;;  %710 = vmatpush.bf16.msra.mxu2 %v1700_v27  ;;  %v1807_v58 = vld [vmem:[%s3810_s1 + $0x100] sm:$0xf]  ;;  %v2388_v59 = vld [vmem:[%s3810_s1 + $0x114] sm:$0xf0]  ;;  %v1728_v60 = vor.u32 %v2369_v52, %v1727_v49  ;;  %v1924_v61 = vor.u32 %v2414_v53, %v1921_v54  ;;  %v2384_v63 = vld [vmem:[%s3810_s1 + $0xfc] sm:$0xf] }
  0x30   : > { %749 = vmatpush.bf16.msrb.mxu3 %v1896_v20  ;;  %v1703_v62 = vld [vmem:[%s3810_s1 + $0x38] sm:$0xf]  ;;  %v1801_v0 = vld [vmem:[%s3810_s1 + $0x110] sm:$0xf0]  ;;  %v2363_v1 = vld [vmem:[%s3810_s1 + $0x4c] sm:$0xf0]  ;;  %v1808_v4 = vor.u32 %v2388_v59, %v1807_v58 }
  0x31   : > { %v2408_v2 = vld [vmem:[%s3810_s1 + $0x1bc] sm:$0xf]  ;;  %v1897_v3 = vld [vmem:[%s3810_s1 + $0x1d0] sm:$0xf0]  ;;  %v1804_v5 = vor.u32 %v2384_v63, %v1801_v0  ;;  %v1783_v6 = vld [vmem:[%s3810_s1 + $0xd0] sm:$0xf]  ;;  %v1704_v9 = vor.u32 %v2363_v1, %v1703_v62 }
  0x32   : > { %685 = vmatpush.bf16.msra.mxu0 %v1672_v41  ;;  %v2382_v7 = vld [vmem:[%s3810_s1 + $0xe4] sm:$0xf0]  ;;  %v1900_v10 = vor.u32 %v2408_v2, %v1897_v3  ;;  %v2357_v11 = vld [vmem:[%s3810_s1 + $0x1c] sm:$0xf0]  ;;  %v2378_v12 = vld [vmem:[%s3810_s1 + $0xcc] sm:$0xf] }
  0x33   : > { %733 = vmatpush.bf16.msrb.mxu1 %v1776_v32  ;;  %711 = vmatpush.bf16.msra.mxu2 %v1676_v42  ;;  %v1679_v8 = vld [vmem:[%s3810_s1 + $0x8] sm:$0xf]  ;;  %v1777_v13 = vld [vmem:[%s3810_s1 + $0xe0] sm:$0xf0]  ;;  %v2402_v14 = vld [vmem:[%s3810_s1 + $0x18c] sm:$0xf]  ;;  %v1784_v17 = vor.u32 %v2382_v7, %v1783_v6 }
  0x34   : > { %750 = vmatpush.bf16.msrb.mxu3 %v1872_v36  ;;  %v1873_v15 = vld [vmem:[%s3810_s1 + $0x1a0] sm:$0xf0]  ;;  %v1857_v18 = vld [vmem:[%s3810_s1 + $0x178] sm:$0xf0]  ;;  %v1951_v19 = vld [vmem:[%s3810_s1 + $0x220] sm:$0xf]  ;;  %v1780_v21 = vor.u32 %v2378_v12, %v1777_v13  ;;  %v1680_v24 = vor.u32 %v2357_v11, %v1679_v8 }
  0x35   : > { %686 = vmatmul.bf16.vlgmr.msra.gmra.mxu0 %v2958_v56  ;;  %v2397_v16 = vld [vmem:[%s3810_s1 + $0x164] sm:$0xf]  ;;  %v2424_v20 = vld [vmem:[%s3810_s1 + $0x234] sm:$0xf0]  ;;  %v1759_v22 = vld [vmem:[%s3810_s1 + $0xa0] sm:$0xf]  ;;  %v1876_v25 = vor.u32 %v2402_v14, %v1873_v15 }
  0x36   : > { %756 = vmatpush.bf16.msrb.mxu0 %v1852_v43  ;;  %712 = vmatmul.bf16.vlgmr.msra.gmra.mxu2 %v2958_v56  ;;  %v2376_v23 = vld [vmem:[%s3810_s1 + $0xb4] sm:$0xf0]  ;;  %v2372_v26 = vld [vmem:[%s3810_s1 + $0x9c] sm:$0xf]  ;;  %v1753_v27 = vld [vmem:[%s3810_s1 + $0xb0] sm:$0xf0]  ;;  %v1860_v28 = vor.u32 %v2397_v16, %v1857_v18  ;;  %v1952_v30 = vor.u32 %v2424_v20, %v1951_v19 }
  0x37   : > { %734 = vmatpush.bf16.msrb.mxu1 %v1752_v47  ;;  %773 = vmatpush.bf16.msrb.mxu2 %v1948_v48  ;;  %v2391_v29 = vld [vmem:[%s3810_s1 + $0x134] sm:$0xf]  ;;  %v1760_v32 = vor.u32 %v2376_v23, %v1759_v22  ;;  %v1833_v33 = vld [vmem:[%s3810_s1 + $0x148] sm:$0xf0]  ;;  %v1927_v34 = vld [vmem:[%s3810_s1 + $0x1f0] sm:$0xf]  ;;  %v1756_v36 = vor.u32 %v2372_v26, %v1753_v27 }
  0x38   : > { %782 = vmatpush.bf16.msra.mxu3 %v1856_v40  ;;  %v2418_v35 = vld [vmem:[%s3810_s1 + $0x204] sm:$0xf0]  ;;  %v1735_v37 = vld [vmem:[%s3810_s1 + $0x70] sm:$0xf]  ;;  %v2366_v39 = vld [vmem:[%s3810_s1 + $0x6c] sm:$0xf]  ;;  %v1836_v41 = vor.u32 %v2391_v29, %v1833_v33 }
  0x39   : > { %v2370_v38 = vld [vmem:[%s3810_s1 + $0x84] sm:$0xf0]  ;;  %v1729_v40 = vld [vmem:[%s3810_s1 + $0x80] sm:$0xf0]  ;;  %v1928_v43 = vor.u32 %v2418_v35, %v1927_v34  ;;  %v1809_v45 = vld [vmem:[%s3810_s1 + $0x118] sm:$0xf0] }
  0x3a   : > { %757 = vmatpush.bf16.msrb.mxu0 %v1828_v57  ;;  %v2385_v42 = vld [vmem:[%s3810_s1 + $0x104] sm:$0xf]  ;;  %v1736_v44 = vor.u32 %v2370_v38, %v1735_v37  ;;  %v1903_v46 = vld [vmem:[%s3810_s1 + $0x1c0] sm:$0xf]  ;;  %v2412_v47 = vld [vmem:[%s3810_s1 + $0x1d4] sm:$0xf0]  ;;  %v1732_v48 = vor.u32 %v2366_v39, %v1729_v40 }
  0x3b   : > { %735 = vmatpush.bf16.msrb.mxu1 %v1728_v60  ;;  %774 = vmatpush.bf16.msrb.mxu2 %v1924_v61  ;;  %v1711_v49 = vld [vmem:[%s3810_s1 + $0x40] sm:$0xf]  ;;  %v2364_v50 = vld [vmem:[%s3810_s1 + $0x54] sm:$0xf0]  ;;  %v2360_v51 = vld [vmem:[%s3810_s1 + $0x3c] sm:$0xf]  ;;  %v1812_v53 = vor.u32 %v2385_v42, %v1809_v45  ;;  %v1904_v57 = vor.u32 %v2412_v47, %v1903_v46 }
  0x3c   : > { %783 = vmatpush.bf16.msra.mxu3 %v1832_v55  ;;  %v1705_v52 = vld [vmem:[%s3810_s1 + $0x50] sm:$0xf0]  ;;  %v1687_v54 = vld [vmem:[%s3810_s1 + $0x10] sm:$0xf]  ;;  %v1712_v58 = vor.u32 %v2364_v50, %v1711_v49  ;;  %v1785_v59 = vld [vmem:[%s3810_s1 + $0xe8] sm:$0xf0] }
  0x3d   : > { %1959 = vmatmul.msk.bf16.vlgmr.msrb.gmra.mxu3 %vm674_vm0, %v2909_v31  ;;  %v2379_v55 = vld [vmem:[%s3810_s1 + $0xd4] sm:$0xf]  ;;  %v1879_v60 = vld [vmem:[%s3810_s1 + $0x190] sm:$0xf]  ;;  %v2406_v61 = vld [vmem:[%s3810_s1 + $0x1a4] sm:$0xf0]  ;;  %v1708_v62 = vor.u32 %v2360_v51, %v1705_v52 }
  0x3e   : > { %758 = vmatpush.bf16.msrb.mxu0 %v1804_v5  ;;  %v2358_v63 = vld [vmem:[%s3810_s1 + $0x24] sm:$0xf0]  ;;  %v2021_v0 = vld [vmem:[%s3812_s3 + $0x70] sm:$0xf]  ;;  %v2440_v1 = vld [vmem:[%s3812_s3 + $0x74] sm:$0xf0]  ;;  %v1880_v7 = vor.u32 %v2406_v61, %v1879_v60 }
  0x3f   : > { %736 = vmatpush.bf16.msrb.mxu1 %v1704_v9  ;;  %775 = vmatpush.bf16.msrb.mxu2 %v1900_v10  ;;  %v2354_v2 = vld [vmem:[%s3810_s1 + $0xc] sm:$0xf]  ;;  %v1681_v3 = vld [vmem:[%s3810_s1 + $0x20] sm:$0xf0]  ;;  %v1953_v6 = vld [vmem:[%s3810_s1 + $0x238] sm:$0xf0]  ;;  %v1688_v8 = vor.u32 %v2358_v63, %v1687_v54  ;;  %v2022_v11 = vor.u32 %v2440_v1, %v2021_v0 }
  0x40   : > { %784 = vmatpush.bf16.msra.mxu3 %v1808_v4  ;;  %v1788_v4 = vor.u32 %v2379_v55, %v1785_v59  ;;  %v2421_v5 = vld [vmem:[%s3810_s1 + $0x224] sm:$0xf]  ;;  %v1761_v10 = vld [vmem:[%s3810_s1 + $0xb8] sm:$0xf0]  ;;  %v1684_v12 = vor.u32 %v2354_v2, %v1681_v3  ;;  %v2013_v13 = vld [vmem:[%s3812_s3 + $0x60] sm:$0xf] }
  0x41   : > { %v2373_v9 = vld [vmem:[%s3810_s1 + $0xa4] sm:$0xf]  ;;  %v2438_v14 = vld [vmem:[%s3812_s3 + $0x64] sm:$0xf0]  ;;  %v1956_v15 = vor.u32 %v2421_v5, %v1953_v6  ;;  %v2415_v18 = vld [vmem:[%s3810_s1 + $0x1f4] sm:$0xf] }
  0x42   : > { %759 = vmatpush.bf16.msrb.mxu0 %v1780_v21  ;;  %v1764_v16 = vor.u32 %v2373_v9, %v1761_v10  ;;  %v1929_v19 = vld [vmem:[%s3810_s1 + $0x208] sm:$0xf0]  ;;  %v2014_v21 = vor.u32 %v2438_v14, %v2013_v13  ;;  %v2085_v22 = vld [vmem:[%s3812_s3 + $0xf0] sm:$0xf]  ;;  %v2456_v23 = vld [vmem:[%s3812_s3 + $0xf4] sm:$0xf0] }
  0x43   : > { %737 = vmatpush.bf16.msrb.mxu1 %v1680_v24  ;;  %776 = vmatpush.bf16.msrb.mxu2 %v1876_v25  ;;  %v1737_v20 = vld [vmem:[%s3810_s1 + $0x88] sm:$0xf0]  ;;  %v2005_v24 = vld [vmem:[%s3812_s3 + $0x50] sm:$0xf]  ;;  %v2436_v25 = vld [vmem:[%s3812_s3 + $0x54] sm:$0xf0]  ;;  %v2086_v26 = vor.u32 %v2456_v23, %v2085_v22  ;;  %v1932_v27 = vor.u32 %v2415_v18, %v1929_v19 }
  0x44   : > { %785 = vmatpush.bf16.msra.mxu3 %v1784_v17  ;;  %v2367_v17 = vld [vmem:[%s3810_s1 + $0x74] sm:$0xf]  ;;  %v2361_v29 = vld [vmem:[%s3810_s1 + $0x44] sm:$0xf]  ;;  %v1713_v33 = vld [vmem:[%s3810_s1 + $0x58] sm:$0xf0]  ;;  %v2006_v34 = vor.u32 %v2436_v25, %v2005_v24 }
  0x45   : > { %v2077_v35 = vld [vmem:[%s3812_s3 + $0xe0] sm:$0xf]  ;;  %v2434_v38 = vld [vmem:[%s3812_s3 + $0x44] sm:$0xf0]  ;;  %v1689_v42 = vld [vmem:[%s3810_s1 + $0x28] sm:$0xf0] }
  0x46   : > { %738 = vmatmul.bf16.vlgmr.msrb.gmra.mxu1 %v2958_v56  ;;  %760 = vmatpush.bf16.msrb.mxu0 %v1756_v36  ;;  %v2454_v36 = vld [vmem:[%s3812_s3 + $0xe4] sm:$0xf0]  ;;  %v1997_v37 = vld [vmem:[%s3812_s3 + $0x40] sm:$0xf]  ;;  %v1881_v45 = vld [vmem:[%s3810_s1 + $0x1a8] sm:$0xf0] }
  0x47   : > { %808 = vmatpush.bf16.msra.mxu2 %v1860_v28  ;;  %799 = vmatpush.bf16.msra.mxu1 %v1952_v30  ;;  %v1740_v28 = vor.u32 %v2367_v17, %v1737_v20  ;;  %v2409_v30 = vld [vmem:[%s3810_s1 + $0x1c4] sm:$0xf]  ;;  %v2078_v39 = vor.u32 %v2454_v36, %v2077_v35  ;;  %v2149_v46 = vld [vmem:[%s3812_s3 + $0x170] sm:$0xf]  ;;  %v2472_v47 = vld [vmem:[%s3812_s3 + $0x174] sm:$0xf0] }
  0x48   : > { %786 = vmatpush.bf16.msra.mxu3 %v1760_v32  ;;  %1960 = vmatmul.msk.bf16.vlgmr.msrb.gmra.mxu2 %vm674_vm0, %v2909_v31  ;;  %v1905_v32 = vld [vmem:[%s3810_s1 + $0x1d8] sm:$0xf0]  ;;  %v2213_v49 = vld [vmem:[%s3812_s3 + $0x1f0] sm:$0xf]  ;;  %v2452_v51 = vld [vmem:[%s3812_s3 + $0xd4] sm:$0xf0]  ;;  %v2150_v59 = vor.u32 %v2472_v47, %v2149_v46 }
  0x49   : > { %v1908_v40 = vor.u32 %v2409_v30, %v1905_v32  ;;  %v2069_v50 = vld [vmem:[%s3812_s3 + $0xd0] sm:$0xf]  ;;  %v2488_v52 = vld [vmem:[%s3812_s3 + $0x1f4] sm:$0xf0]  ;;  %v2141_v60 = vld [vmem:[%s3812_s3 + $0x160] sm:$0xf] }
  0x4a   : > { %761 = vmatpush.bf16.msrb.mxu0 %v1732_v48  ;;  %v1998_v48 = vor.u32 %v2434_v38, %v1997_v37  ;;  %v2432_v54 = vld [vmem:[%s3812_s3 + $0x34] sm:$0xf0]  ;;  %v2070_v55 = vor.u32 %v2452_v51, %v2069_v50  ;;  %v2470_v61 = vld [vmem:[%s3812_s3 + $0x164] sm:$0xf0]  ;;  %v2205_v0 = vld [vmem:[%s3812_s3 + $0x1e0] sm:$0xf] }
  0x4b   : > { %809 = vmatpush.bf16.msra.mxu2 %v1836_v41  ;;  %800 = vmatpush.bf16.msra.mxu1 %v1928_v43  ;;  %v2355_v41 = vld [vmem:[%s3810_s1 + $0x14] sm:$0xf]  ;;  %v2486_v1 = vld [vmem:[%s3812_s3 + $0x1e4] sm:$0xf0]  ;;  %v2061_v2 = vld [vmem:[%s3812_s3 + $0xc0] sm:$0xf] }
  0x4c   : > { %787 = vmatpush.bf16.msra.mxu3 %v1736_v44  ;;  %v2403_v43 = vld [vmem:[%s3810_s1 + $0x194] sm:$0xf]  ;;  %v1716_v44 = vor.u32 %v2361_v29, %v1713_v33  ;;  %v2450_v3 = vld [vmem:[%s3812_s3 + $0xc4] sm:$0xf0]  ;;  %v2468_v9 = vld [vmem:[%s3812_s3 + $0x154] sm:$0xf0]  ;;  %v2206_v10 = vor.u32 %v2486_v1, %v2205_v0 }
  0x4d   : > { %v2430_v5 = vld [vmem:[%s3812_s3 + $0x24] sm:$0xf0]  ;;  %v2062_v6 = vor.u32 %v2450_v3, %v2061_v2  ;;  %v2484_v13 = vld [vmem:[%s3812_s3 + $0x1d4] sm:$0xf0]  ;;  %v1973_v14 = vld [vmem:[%s3812_s3 + $0x10] sm:$0xf] }
  0x4e   : > { %762 = vmatpush.bf16.msrb.mxu0 %v1708_v62  ;;  %v2214_v62 = vor.u32 %v2488_v52, %v2213_v49  ;;  %v2125_v17 = vld [vmem:[%s3812_s3 + $0x140] sm:$0xf]  ;;  %v2426_v22 = vld [vmem:[%s3812_s3 + $0x4] sm:$0xf0]  ;;  %v2117_v24 = vld [vmem:[%s3812_s3 + $0x130] sm:$0xf] }
  0x4f   : > { %810 = vmatpush.bf16.msra.mxu2 %v1812_v53  ;;  %801 = vmatpush.bf16.msra.mxu1 %v1904_v57  ;;  %v1989_v53 = vld [vmem:[%s3812_s3 + $0x30] sm:$0xf]  ;;  %v1884_v57 = vor.u32 %v2403_v43, %v1881_v45  ;;  %v2189_v20 = vld [vmem:[%s3812_s3 + $0x1c0] sm:$0xf]  ;;  %v2464_v25 = vld [vmem:[%s3812_s3 + $0x134] sm:$0xf0] }
  0x50   : > { %788 = vmatpush.bf16.msra.mxu3 %v1712_v58  ;;  %v1692_v58 = vor.u32 %v2355_v41, %v1689_v42  ;;  %v1990_v63 = vor.u32 %v2432_v54, %v1989_v53  ;;  %v2109_v29 = vld [vmem:[%s3812_s3 + $0x120] sm:$0xf]  ;;  %v2462_v30 = vld [vmem:[%s3812_s3 + $0x124] sm:$0xf0]  ;;  %v2101_v33 = vld [vmem:[%s3812_s3 + $0x110] sm:$0xf] }
  0x51   : > { %v2110_v32 = vor.u32 %v2462_v30, %v2109_v29  ;;  %v2093_v36 = vld [vmem:[%s3812_s3 + $0x100] sm:$0xf]  ;;  %v2458_v37 = vld [vmem:[%s3812_s3 + $0x104] sm:$0xf0]  ;;  %v2439_v38 = vld [vmem:[%s3812_s3 + $0x74] sm:$0xf] }
  0x52   : > { %763 = vmatpush.bf16.msrb.mxu0 %v1684_v12  ;;  %v2197_v12 = vld [vmem:[%s3812_s3 + $0x1d0] sm:$0xf]  ;;  %v2480_v43 = vld [vmem:[%s3812_s3 + $0x1b4] sm:$0xf0]  ;;  %v2437_v47 = vld [vmem:[%s3812_s3 + $0x64] sm:$0xf] }
  0x53   : > { %811 = vmatpush.bf16.msra.mxu2 %v1788_v4  ;;  %802 = vmatpush.bf16.msra.mxu1 %v1880_v7  ;;  %v1981_v4 = vld [vmem:[%s3812_s3 + $0x20] sm:$0xf]  ;;  %v2142_v7 = vor.u32 %v2470_v61, %v2141_v60  ;;  %v2198_v18 = vor.u32 %v2484_v13, %v2197_v12  ;;  %v2181_v42 = vld [vmem:[%s3812_s3 + $0x1b0] sm:$0xf]  ;;  %v2504_v46 = vld [vmem:[%s3812_s3 + $0x274] sm:$0xf0] }
  0x54   : > { %789 = vmatpush.bf16.msra.mxu3 %v1688_v8  ;;  %v2133_v8 = vld [vmem:[%s3812_s3 + $0x150] sm:$0xf]  ;;  %v2182_v45 = vor.u32 %v2480_v43, %v2181_v42  ;;  %v2448_v52 = vld [vmem:[%s3812_s3 + $0xb4] sm:$0xf0]  ;;  %v2173_v53 = vld [vmem:[%s3812_s3 + $0x1a0] sm:$0xf] }
  0x55   : > { %764 = vmatmul.bf16.vlgmr.msrb.gmra.mxu0 %v2958_v56  ;;  %v2053_v51 = vld [vmem:[%s3812_s3 + $0xb0] sm:$0xf]  ;;  %v2435_v61 = vld [vmem:[%s3812_s3 + $0x54] sm:$0xf]  ;;  %v2446_v1 = vld [vmem:[%s3812_s3 + $0xa4] sm:$0xf0] }
  0x56   : > { %825 = vmatpush.bf16.msra.mxu0 %v1956_v15  ;;  %1961 = vmatmul.msk.bf16.vlgmr.msra.gmra.mxu1 %vm674_vm0, %v2909_v31  ;;  %v2428_v15 = vld [vmem:[%s3812_s3 + $0x14] sm:$0xf0]  ;;  %v2054_v54 = vor.u32 %v2448_v52, %v2053_v51  ;;  %v2165_v2 = vld [vmem:[%s3812_s3 + $0x190] sm:$0xf]  ;;  %v2494_v42 = vld [vmem:[%s3812_s3 + $0x224] sm:$0xf0] }
  0x57   : > { %1428 = vmatpush.bf16.msrb.mxu1 %v2022_v11  ;;  %790 = vmatmul.bf16.vlgmr.msra.gmra.mxu3 %v2958_v56  ;;  %v1982_v11 = vor.u32 %v2430_v5, %v1981_v4  ;;  %v1974_v19 = vor.u32 %v2428_v15, %v1973_v14  ;;  %v2476_v3 = vld [vmem:[%s3812_s3 + $0x194] sm:$0xf0]  ;;  %v2037_v12 = vld [vmem:[%s3812_s3 + $0x90] sm:$0xf]  ;;  %v2157_v15 = vld [vmem:[%s3812_s3 + $0x180] sm:$0xf] }
  0x58   : > { %812 = vmatpush.bf16.msra.mxu2 %v1764_v16  ;;  %1441 = vmatpush.bf16.msrb.mxu3 %v2086_v26  ;;  %v2134_v16 = vor.u32 %v2468_v9, %v2133_v8  ;;  %v2166_v5 = vor.u32 %v2476_v3, %v2165_v2  ;;  %v2433_v8 = vld [vmem:[%s3812_s3 + $0x44] sm:$0xf]  ;;  %v2444_v13 = vld [vmem:[%s3812_s3 + $0x94] sm:$0xf0]  ;;  %v2341_v30 = vld [vmem:[%s3812_s3 + $0x2f0] sm:$0xf] }
  0x59   : > { %v2038_v14 = vor.u32 %v2444_v13, %v2037_v12  ;;  %v2496_v29 = vld [vmem:[%s3812_s3 + $0x234] sm:$0xf0]  ;;  %v2333_v43 = vld [vmem:[%s3812_s3 + $0x2e0] sm:$0xf]  ;;  %v2071_v51 = vld [vmem:[%s3812_s3 + $0xd8] sm:$0xf0] }
  0x5a   : > { %826 = vmatpush.bf16.msra.mxu0 %v1932_v27  ;;  %v2221_v2 = vld [vmem:[%s3812_s3 + $0x200] sm:$0xf]  ;;  %v2490_v3 = vld [vmem:[%s3812_s3 + $0x204] sm:$0xf0]  ;;  %v2309_v13 = vld [vmem:[%s3812_s3 + $0x2b0] sm:$0xf] }
  0x5b   : > { %1429 = vmatpush.bf16.msrb.mxu1 %v2014_v21  ;;  %v1965_v21 = vld [vmem:[%s3812_s3] sm:$0xf]  ;;  %s2575_s8 = sshra.s32 %s1603_s25, 4  ;;  %s2581_s12 = scalar_lea.hbm %s3814_s5, 32  ;;  %s2576_s8 = int_to_ptr.hbm [resolvable:$true] %s2575_s8 }
  0x5c   : > { %813 = vmatpush.bf16.msra.mxu2 %v1740_v28  ;;  %1442 = vmatpush.bf16.msrb.mxu3 %v2078_v39  ;;  %v1966_v27 = vor.u32 %v2426_v22, %v1965_v21  ;;  %v2118_v28 = vor.u32 %v2464_v25, %v2117_v24  ;;  %v2023_v39 = vld [vmem:[%s3812_s3 + $0x78] sm:$0xf0]  ;;  %v2455_v21 = vld [vmem:[%s3812_s3 + $0xf4] sm:$0xf]  ;;  %v2029_v25 = vld [vmem:[%s3812_s3 + $0x80] sm:$0xf]  ;;  %p2582_p0 = scmp.lt.s32.totalorder %s2576_s8, %s3814_s5 }
  0x5d   : > { %v2026_v41 = vor.u32 %v2439_v38, %v2023_v39  ;;  %v2087_v22 = vld [vmem:[%s3812_s3 + $0xf8] sm:$0xf0]  ;;  %v2453_v38 = vld [vmem:[%s3812_s3 + $0xe4] sm:$0xf]  ;;  %v2079_v39 = vld [vmem:[%s3812_s3 + $0xe8] sm:$0xf0] }
  0x5e   : > { %827 = vmatpush.bf16.msra.mxu0 %v1908_v40  ;;  %v2094_v40 = vor.u32 %v2458_v37, %v2093_v36  ;;  %v2090_v24 = vor.u32 %v2455_v21, %v2087_v22  ;;  %v2510_v21 = vld [vmem:[%s3812_s3 + $0x2a4] sm:$0xf0]  ;;  %s2577_s9 = scalar_lea.hbm %s2576_s8, 16 }
  0x5f   : > { %1430 = vmatpush.bf16.msrb.mxu1 %v2006_v34  ;;  %v2460_v34 = vld [vmem:[%s3812_s3 + $0x114] sm:$0xf0]  ;;  %p2578_p11 = scmp.ne.s32.totalorder %s2576_s8, %s2577_s9  ;;  %p2583_p1 = scmp.lt.s32.totalorder %s2581_s12, %s2577_s9 }
  0x60   : > { %814 = vmatpush.bf16.msra.mxu2 %v1716_v44  ;;  %1443 = vmatpush.bf16.msrb.mxu3 %v2070_v55  ;;  %v2102_v35 = vor.u32 %v2460_v34, %v2101_v33  ;;  %v2277_v44 = vld [vmem:[%s3812_s3 + $0x270] sm:$0xf]  ;;  %v2478_v55 = vld [vmem:[%s3812_s3 + $0x1a4] sm:$0xf0]  ;;  %v2520_v33 = vld [vmem:[%s3812_s3 + $0x2f4] sm:$0xf0] }
  0x61   : > { %v2278_v49 = vor.u32 %v2504_v46, %v2277_v44  ;;  %v2429_v34 = vld [vmem:[%s3812_s3 + $0x24] sm:$0xf]  ;;  %v2342_v36 = vor.u32 %v2520_v33, %v2341_v30  ;;  %v2427_v46 = vld [vmem:[%s3812_s3 + $0x14] sm:$0xf]  ;;  %v2151_v30 = vld [vmem:[%s3812_s3 + $0x178] sm:$0xf0]  ;;  %p2579_p12 = pnand %p2578_p11, %p2693_p5  ;;  %p2584_p2 = por %p2583_p1, %p2582_p0 }
  0x62   : > { %828 = vmatpush.bf16.msra.mxu0 %v1884_v57  ;;  %v2269_v57 = vld [vmem:[%s3812_s3 + $0x260] sm:$0xf]  ;;  %v2293_v33 = vld [vmem:[%s3812_s3 + $0x290] sm:$0xf] }
  0x63   : > { %1431 = vmatpush.bf16.msrb.mxu1 %v1998_v48  ;;  %v2015_v48 = vld [vmem:[%s3812_s3 + $0x68] sm:$0xf0]  ;;  %p2580_p13 = pneg %p2579_p12 }
  0x64   : > { %815 = vmatpush.bf16.msra.mxu2 %v1692_v58  ;;  %1444 = vmatpush.bf16.msrb.mxu3 %v2062_v6  ;;  %v2018_v50 = vor.u32 %v2437_v47, %v2015_v48  ;;  %v2502_v58 = vld [vmem:[%s3812_s3 + $0x264] sm:$0xf0]  ;;  %v2261_v6 = vld [vmem:[%s3812_s3 + $0x250] sm:$0xf]  ;;  %v1975_v47 = vld [vmem:[%s3812_s3 + $0x18] sm:$0xf0] }
  0x65   : > { %1962 = vmatmul.msk.bf16.vlgmr.msra.gmra.mxu0 %vm674_vm0, %v2909_v31  ;;  %v2482_v31 = vld [vmem:[%s3812_s3 + $0x1c4] sm:$0xf0]  ;;  %v2270_v60 = vor.u32 %v2502_v58, %v2269_v57  ;;  %v2516_v58 = vld [vmem:[%s3812_s3 + $0x2d4] sm:$0xf0]  ;;  %p2585_p3 = pnand %p2584_p2, %p2580_p13 }
  0x66   : > { %1454 = vmatpush.bf16.msrb.mxu0 %v2150_v59  ;;  %v2190_v26 = vor.u32 %v2482_v31, %v2189_v20  ;;  %v2174_v59 = vor.u32 %v2478_v55, %v2173_v53  ;;  %v1991_v31 = vld [vmem:[%s3812_s3 + $0x38] sm:$0xf0]  ;;  %v2229_v53 = vld [vmem:[%s3812_s3 + $0x210] sm:$0xf] }
  0x67   : > { %1432 = vmatpush.bf16.msrb.mxu1 %v1990_v63  ;;  %816 = vmatmul.bf16.vlgmr.msra.gmra.mxu2 %v2958_v56  ;;  %v2466_v56 = vld [vmem:[%s3812_s3 + $0x144] sm:$0xf0]  ;;  %v2045_v63 = vld [vmem:[%s3812_s3 + $0xa0] sm:$0xf]  ;;  %v2325_v55 = vld [vmem:[%s3812_s3 + $0x2d0] sm:$0xf] }
  0x68   : > { %1467 = vmatpush.bf16.msrb.mxu2 %v2214_v62  ;;  %v2126_v23 = vor.u32 %v2466_v56, %v2125_v17  ;;  %v2007_v62 = vld [vmem:[%s3812_s3 + $0x58] sm:$0xf0]  ;;  %1445 = vmatpush.bf16.msrb.mxu3 %v2054_v54  ;;  %v2046_v4 = vor.u32 %v2446_v1, %v2045_v63  ;;  %v2253_v56 = vld [vmem:[%s3812_s3 + $0x240] sm:$0xf]  ;;  %v2492_v54 = vld [vmem:[%s3812_s3 + $0x214] sm:$0xf0] }
  0x69   : > { %v2010_v0 = vor.u32 %v2435_v61, %v2007_v62  ;;  %v2230_v57 = vor.u32 %v2492_v54, %v2229_v53  ;;  %v2326_v61 = vor.u32 %v2516_v58, %v2325_v55  ;;  %v2449_v63 = vld [vmem:[%s3812_s3 + $0xc4] sm:$0xf]  ;;  %v2487_v53 = vld [vmem:[%s3812_s3 + $0x1f4] sm:$0xf]  ;;  %v2215_v54 = vld [vmem:[%s3812_s3 + $0x1f8] sm:$0xf0] }
  0x6a   : > { %1455 = vmatpush.bf16.msrb.mxu0 %v2142_v7  ;;  %v2500_v7 = vld [vmem:[%s3812_s3 + $0x254] sm:$0xf0]  ;;  %v2135_v58 = vld [vmem:[%s3812_s3 + $0x158] sm:$0xf0] }
  0x6b   : > { %1433 = vmatpush.bf16.msrb.mxu1 %v1982_v11  ;;  %v2262_v9 = vor.u32 %v2500_v7, %v2261_v6  ;;  %v2514_v6 = vld [vmem:[%s3812_s3 + $0x2c4] sm:$0xf0]  ;;  %v2447_v7 = vld [vmem:[%s3812_s3 + $0xb4] sm:$0xf] }
  0x6c   : > { %1468 = vmatpush.bf16.msrb.mxu2 %v2206_v10  ;;  %v1999_v10 = vld [vmem:[%s3812_s3 + $0x48] sm:$0xf0]  ;;  %1446 = vmatpush.bf16.msrb.mxu3 %v2046_v4  ;;  %v2317_v4 = vld [vmem:[%s3812_s3 + $0x2c0] sm:$0xf] }
  0x6d   : > { %v2002_v11 = vor.u32 %v2433_v8, %v1999_v10  ;;  %v2055_v8 = vld [vmem:[%s3812_s3 + $0xb8] sm:$0xf0]  ;;  %v3511_v10 = vld [vmem:[%s3811_s2] sm:$0x3f] }
  0x6e   : > { %1456 = vmatpush.bf16.msrb.mxu0 %v2134_v16  ;;  %v2474_v16 = vld [vmem:[%s3812_s3 + $0x184] sm:$0xf0]  ;;  %v2058_v12 = vor.u32 %v2447_v7, %v2055_v8  ;;  %v304_v55 = vperm.slane %v3511_v10, 2  ;;  %v2503_v8 = vld [vmem:[%s3812_s3 + $0x274] sm:$0xf] }
  0x6f   : > { %1434 = vmatpush.bf16.msrb.mxu1 %v1974_v19  ;;  %v2158_v17 = vor.u32 %v2474_v16, %v2157_v15  ;;  %v2431_v19 = vld [vmem:[%s3812_s3 + $0x34] sm:$0xf]  ;;  %v302_v15 = vperm.slane %v3511_v10, 0 }
  0x70   : > { %1469 = vmatpush.bf16.msrb.mxu2 %v2198_v18  ;;  %v2498_v18 = vld [vmem:[%s3812_s3 + $0x244] sm:$0xf0]  ;;  %1447 = vmatpush.bf16.msrb.mxu3 %v2038_v14  ;;  %v2512_v14 = vld [vmem:[%s3812_s3 + $0x2b4] sm:$0xf0] }
  0x71   : > { %v2254_v20 = vor.u32 %v2498_v18, %v2253_v56  ;;  %v2310_v16 = vor.u32 %v2512_v14, %v2309_v13  ;;  %v2047_v56 = vld [vmem:[%s3812_s3 + $0xa8] sm:$0xf0]  ;;  %v2483_v13 = vld [vmem:[%s3812_s3 + $0x1d4] sm:$0xf]  ;;  %v2199_v14 = vld [vmem:[%s3812_s3 + $0x1d8] sm:$0xf0] }
  0x72   : > { %1457 = vmatpush.bf16.msrb.mxu0 %v2126_v23  ;;  %v1994_v23 = vor.u32 %v2431_v19, %v1991_v31  ;;  %v2301_v31 = vld [vmem:[%s3812_s3 + $0x2a0] sm:$0xf] }
  0x73   : > { %1435 = vmatpush.bf16.msrb.mxu1 %v1966_v27 }
  0x74   : > { %1470 = vmatpush.bf16.msrb.mxu2 %v2190_v26  ;;  %v2442_v26 = vld [vmem:[%s3812_s3 + $0x84] sm:$0xf0] }
  0x75   : > { %v2030_v27 = vor.u32 %v2442_v26, %v2029_v25  ;;  %v2039_v25 = vld [vmem:[%s3812_s3 + $0x98] sm:$0xf0] }
  0x76   : > { %1458 = vmatpush.bf16.msrb.mxu0 %v2118_v28  ;;  %v2245_v28 = vld [vmem:[%s3812_s3 + $0x230] sm:$0xf] }
  0x77   : > { %1480 = vmatpush.bf16.msra.mxu1 %v2278_v49  ;;  %1448 = vmatpush.bf16.msrb.mxu3 %v2030_v27  ;;  %v1978_v49 = vor.u32 %v2427_v46, %v1975_v47 }
  0x78   : > { %1471 = vmatpush.bf16.msrb.mxu2 %v2182_v45  ;;  %v2518_v45 = vld [vmem:[%s3812_s3 + $0x2e4] sm:$0xf0] }
  0x79   : > { %v2334_v48 = vor.u32 %v2518_v45, %v2333_v43  ;;  %v2143_v45 = vld [vmem:[%s3812_s3 + $0x168] sm:$0xf0] }
  0x7a   : > { %1459 = vmatpush.bf16.msrb.mxu0 %v2110_v32  ;;  %v2246_v32 = vor.u32 %v2496_v29, %v2245_v28  ;;  %v2471_v29 = vld [vmem:[%s3812_s3 + $0x174] sm:$0xf] }
  0x7b   : > { %1481 = vmatpush.bf16.msra.mxu1 %v2270_v60  ;;  %1493 = vmatpush.bf16.msra.mxu3 %v2342_v36  ;;  %v1967_v60 = vld [vmem:[%s3812_s3 + $0x8] sm:$0xf0] }
  0x7c   : > { %1472 = vmatpush.bf16.msrb.mxu2 %v2174_v59  ;;  %v2425_v59 = vld [vmem:[%s3812_s3 + $0x4] sm:$0xf] }
  0x7d   : > { %v1970_v62 = vor.u32 %v2425_v59, %v1967_v60  ;;  %v2218_v60 = vor.u32 %v2487_v53, %v2215_v54  ;;  %v2457_v53 = vld [vmem:[%s3812_s3 + $0x104] sm:$0xf]  ;;  %v2095_v54 = vld [vmem:[%s3812_s3 + $0x108] sm:$0xf0] }
  0x7e   : > { %1460 = vmatpush.bf16.msrb.mxu0 %v2102_v35  ;;  %v1983_v35 = vld [vmem:[%s3812_s3 + $0x28] sm:$0xf0] }
  0x7f   : > { %1482 = vmatpush.bf16.msra.mxu1 %v2262_v9  ;;  %v1986_v37 = vor.u32 %v2429_v34, %v1983_v35  ;;  %1494 = vmatpush.bf16.msra.mxu3 %v2334_v48  ;;  %v2508_v34 = vld [vmem:[%s3812_s3 + $0x294] sm:$0xf0]  ;;  %v2285_v48 = vld [vmem:[%s3812_s3 + $0x280] sm:$0xf] }
  0x80   : > { %1473 = vmatpush.bf16.msrb.mxu2 %v2166_v5  ;;  %v2222_v5 = vor.u32 %v2490_v3, %v2221_v2  ;;  %v2294_v36 = vor.u32 %v2508_v34, %v2293_v33  ;;  %v305_v34 = vperm.slane %v3511_v10, 3 }
  0x82   : > { %1461 = vmatpush.bf16.msrb.mxu0 %v2094_v40  ;;  %v2082_v40 = vor.u32 %v2453_v38, %v2079_v39  ;;  %v2031_v38 = vld [vmem:[%s3812_s3 + $0x88] sm:$0xf0]  ;;  %v2154_v39 = vor.u32 %v2471_v29, %v2151_v30  ;;  %v2499_v30 = vld [vmem:[%s3812_s3 + $0x254] sm:$0xf] }
  0x83   : > { %1483 = vmatpush.bf16.msra.mxu1 %v2254_v20  ;;  %1495 = vmatpush.bf16.msra.mxu3 %v2326_v61 }
  0x84   : > { %1474 = vmatpush.bf16.msrb.mxu2 %v2158_v17  ;;  %v2445_v17 = vld [vmem:[%s3812_s3 + $0xa4] sm:$0xf] }
  0x85   : > { %v2050_v18 = vor.u32 %v2445_v17, %v2047_v56  ;;  %v2119_v17 = vld [vmem:[%s3812_s3 + $0x138] sm:$0xf0] }
  0x86   : > { %1506 = vmatpush.bf16.msra.mxu0 %v2026_v41  ;;  %v2237_v41 = vld [vmem:[%s3812_s3 + $0x220] sm:$0xf] }
  0x87   : > { %1484 = vmatpush.bf16.msra.mxu1 %v2246_v32  ;;  %v2238_v44 = vor.u32 %v2494_v42, %v2237_v41  ;;  %v303_v32 = vperm.slane %v3511_v10, 1 }
  0x88   : > { %1519 = vmatpush.bf16.msra.mxu2 %v2090_v24  ;;  %v2443_v24 = vld [vmem:[%s3812_s3 + $0x94] sm:$0xf] }
  0x89   : > { %v2042_v27 = vor.u32 %v2443_v24, %v2039_v25  ;;  %v2191_v24 = vld [vmem:[%s3812_s3 + $0x1c8] sm:$0xf0] }
  0x8a   : > { %1507 = vmatpush.bf16.msra.mxu0 %v2018_v50  ;;  %v2451_v50 = vld [vmem:[%s3812_s3 + $0xd4] sm:$0xf] }
  0x8b   : > { %v2074_v52 = vor.u32 %v2451_v50, %v2071_v51  ;;  %1485 = vmatpush.bf16.msra.mxu1 %v2238_v44  ;;  %v2469_v44 = vld [vmem:[%s3812_s3 + $0x164] sm:$0xf] }
  0x8c   : > { %1520 = vmatpush.bf16.msra.mxu2 %v2082_v40 }
  0x8e   : > { %1508 = vmatpush.bf16.msra.mxu0 %v2010_v0  ;;  %v2063_v0 = vld [vmem:[%s3812_s3 + $0xc8] sm:$0xf0] }
  0x8f   : > { %v2066_v1 = vor.u32 %v2449_v63, %v2063_v0  ;;  %1486 = vmatpush.bf16.msra.mxu1 %v2230_v57  ;;  %v2467_v57 = vld [vmem:[%s3812_s3 + $0x154] sm:$0xf]  ;;  %v2485_v0 = vld [vmem:[%s3812_s3 + $0x1e4] sm:$0xf] }
  0x90   : > { %1521 = vmatpush.bf16.msra.mxu2 %v2074_v52  ;;  %v2146_v52 = vor.u32 %v2469_v44, %v2143_v45  ;;  %v2138_v63 = vor.u32 %v2467_v57, %v2135_v58  ;;  %v2255_v44 = vld [vmem:[%s3812_s3 + $0x248] sm:$0xf0]  ;;  %v2519_v58 = vld [vmem:[%s3812_s3 + $0x2f4] sm:$0xf] }
  0x92   : > { %1509 = vmatpush.bf16.msra.mxu0 %v2002_v11  ;;  %v2318_v11 = vor.u32 %v2514_v6, %v2317_v4  ;;  %v2465_v4 = vld [vmem:[%s3812_s3 + $0x144] sm:$0xf] }
  0x93   : > { %1487 = vmatpush.bf16.msra.mxu1 %v2222_v5  ;;  %v2127_v5 = vld [vmem:[%s3812_s3 + $0x148] sm:$0xf0] }
  0x94   : > { %1522 = vmatpush.bf16.msra.mxu2 %v2066_v1  ;;  %1496 = vmatpush.bf16.msra.mxu3 %v2318_v11  ;;  %v2207_v1 = vld [vmem:[%s3812_s3 + $0x1e8] sm:$0xf0] }
  0x95   : > { %v2210_v11 = vor.u32 %v2485_v0, %v2207_v1 }
  0x96   : > { %1510 = vmatpush.bf16.msra.mxu0 %v1994_v23  ;;  %v2302_v23 = vor.u32 %v2510_v21, %v2301_v31  ;;  %v2202_v31 = vor.u32 %v2483_v13, %v2199_v14  ;;  %v2493_v14 = vld [vmem:[%s3812_s3 + $0x224] sm:$0xf] }
  0x98   : > { %1523 = vmatpush.bf16.msra.mxu2 %v2058_v12  ;;  %1497 = vmatpush.bf16.msra.mxu3 %v2310_v16  ;;  %v2130_v12 = vor.u32 %v2465_v4, %v2127_v5  ;;  %v2463_v16 = vld [vmem:[%s3812_s3 + $0x134] sm:$0xf]  ;;  %v2167_v4 = vld [vmem:[%s3812_s3 + $0x198] sm:$0xf0] }
  0x9a   : > { %1511 = vmatpush.bf16.msra.mxu0 %v1986_v37  ;;  %v2441_v37 = vld [vmem:[%s3812_s3 + $0x84] sm:$0xf] }
  0x9b   : > { %v2034_v40 = vor.u32 %v2441_v37, %v2031_v38  ;;  %v2183_v37 = vld [vmem:[%s3812_s3 + $0x1b8] sm:$0xf0]  ;;  %v2459_v38 = vld [vmem:[%s3812_s3 + $0x114] sm:$0xf] }
  0x9c   : > { %1524 = vmatpush.bf16.msra.mxu2 %v2050_v18  ;;  %1498 = vmatpush.bf16.msra.mxu3 %v2302_v23  ;;  %v2481_v23 = vld [vmem:[%s3812_s3 + $0x1c4] sm:$0xf] }
  0x9d   : > { %v2194_v33 = vor.u32 %v2481_v23, %v2191_v24  ;;  %v2327_v23 = vld [vmem:[%s3812_s3 + $0x2d8] sm:$0xf0] }
  0x9e   : > { %1512 = vmatpush.bf16.msra.mxu0 %v1978_v49  ;;  %v2506_v49 = vld [vmem:[%s3812_s3 + $0x284] sm:$0xf0] }
  0x9f   : > { %v2286_v50 = vor.u32 %v2506_v49, %v2285_v48  ;;  %v2477_v49 = vld [vmem:[%s3812_s3 + $0x1a4] sm:$0xf] }
  0xa0   : > { %1525 = vmatpush.bf16.msra.mxu2 %v2042_v27  ;;  %1499 = vmatpush.bf16.msra.mxu3 %v2294_v36  ;;  %v2111_v27 = vld [vmem:[%s3812_s3 + $0x128] sm:$0xf0]  ;;  %v2479_v36 = vld [vmem:[%s3812_s3 + $0x1b4] sm:$0xf] }
  0xa1   : > { %v2186_v45 = vor.u32 %v2479_v36, %v2183_v37  ;;  %v307_v36 = vperm.slane %v3511_v10, 5 }
  0xa2   : > { %1513 = vmatpush.bf16.msra.mxu0 %v1970_v62 }
  0xa4   : > { %1526 = vmatpush.bf16.msra.mxu2 %v2034_v40  ;;  %1500 = vmatpush.bf16.msra.mxu3 %v2286_v50  ;;  %v2175_v50 = vld [vmem:[%s3812_s3 + $0x1a8] sm:$0xf0] }
  0xa9   : > { %v700_v9 = vpop.f32.mrf.mxu1 }
  0xb0   : > { %v726_v19 = vpop.f32.mrf.mxu3 }
  0xb1   : > { %v702_v26 = vpop.f32.mrf.mxu1 }
  0xb2   : > { %v687_v20 = vpop.f32.mrf.mxu0  ;;  %v2461_v26 = vld [vmem:[%s3812_s3 + $0x124] sm:$0xf] }
  0xb3   : > { %v688_v22 = vadd.f32 %v687_v20, %v302_v15  ;;  %v2271_v20 = vld [vmem:[%s3812_s3 + $0x268] sm:$0xf0] }
  0xb5   : > { %v701_v28 = vadd.f32 %v700_v9, %v688_v22  ;;  %v2279_v9 = vld [vmem:[%s3812_s3 + $0x278] sm:$0xf0]  ;;  %v2122_v22 = vor.u32 %v2463_v16, %v2119_v17 }
  0xb6   : > { %v2282_v56 = vor.u32 %v2503_v8, %v2279_v9  ;;  %v2517_v9 = vld [vmem:[%s3812_s3 + $0x2e4] sm:$0xf] }
  0xb7   : > { %v834_v35 = vmax.f32 %v701_v28, 0.0 }
  0xb8   : > { %v728_v41 = vpop.f32.mrf.mxu3 }
  0xb9   : > { %v3557_v42 = vpack.c.bf16 %v834_v35, %v834_v35  ;;  %v713_v43 = vpop.f32.mrf.mxu2  ;;  %v2114_v35 = vor.u32 %v2461_v26, %v2111_v27 }
  0xba   : > { %v714_v46 = vadd.f32 %v713_v43, %v303_v32  ;;  %v689_v47 = vpop.f32.mrf.mxu0  ;;  %v2263_v32 = vld [vmem:[%s3812_s3 + $0x258] sm:$0xf0]  ;;  %v2497_v43 = vld [vmem:[%s3812_s3 + $0x244] sm:$0xf] }
  0xbb   : > { %1436 = vmatmul.bf16.vlgmr.msrb.gmra.mxu1 %v3557_v42  ;;  %v2266_v40 = vor.u32 %v2499_v30, %v2263_v32  ;;  %v2258_v57 = vor.u32 %v2497_v43, %v2255_v44  ;;  %v2513_v30 = vld [vmem:[%s3812_s3 + $0x2c4] sm:$0xf]  ;;  %v2319_v32 = vld [vmem:[%s3812_s3 + $0x2c8] sm:$0xf0] }
  0xbc   : > { %v727_v51 = vadd.f32 %v726_v19, %v714_v46  ;;  %1532 = vmatpush.bf16.msrb.mxu1 %v2154_v39  ;;  %v2501_v19 = vld [vmem:[%s3812_s3 + $0x264] sm:$0xf]  ;;  %v2103_v39 = vld [vmem:[%s3812_s3 + $0x118] sm:$0xf0]  ;;  %v2322_v37 = vor.u32 %v2513_v30, %v2319_v32 }
  0xbd   : > { %v2274_v29 = vor.u32 %v2501_v19, %v2271_v20  ;;  %v2106_v48 = vor.u32 %v2459_v38, %v2103_v39  ;;  %v2159_v19 = vld [vmem:[%s3812_s3 + $0x188] sm:$0xf0]  ;;  %v2511_v39 = vld [vmem:[%s3812_s3 + $0x2b4] sm:$0xf] }
  0xbe   : > { %v835_v59 = vmax.f32 %v727_v51, 0.0 }
  0xc0   : > { %v3585_v61 = vpack.c.bf16 %v835_v59, %v835_v59  ;;  %1533 = vmatpush.bf16.msrb.mxu1 %v2146_v52  ;;  %v752_v6 = vpop.f32.mrf.mxu3  ;;  %v306_v52 = vperm.slane %v3511_v10, 4  ;;  %v2343_v59 = vld [vmem:[%s3812_s3 + $0x2f8] sm:$0xf0]  ;;  %v2509_v10 = vld [vmem:[%s3812_s3 + $0x2a4] sm:$0xf] }
  0xc1   : > { %v715_v3 = vpop.f32.mrf.mxu2 }
  0xc2   : > { %1449 = vmatmul.bf16.vlgmr.msrb.gmra.mxu3 %v3585_v61  ;;  %v2475_v3 = vld [vmem:[%s3812_s3 + $0x194] sm:$0xf] }
  0xc3   : > { %v739_v62 = vpop.f32.mrf.mxu1  ;;  %1545 = vmatpush.bf16.msrb.mxu3 %v2218_v60  ;;  %v2495_v60 = vld [vmem:[%s3812_s3 + $0x234] sm:$0xf]  ;;  %v2170_v16 = vor.u32 %v2475_v3, %v2167_v4 }
  0xc4   : > { %v740_v2 = vadd.f32 %v739_v62, %v304_v55  ;;  %1534 = vmatpush.bf16.msrb.mxu1 %v2138_v63  ;;  %v2247_v62 = vld [vmem:[%s3812_s3 + $0x238] sm:$0xf0]  ;;  %v2178_v63 = vor.u32 %v2477_v49, %v2175_v50 }
  0xc5   : > { %v2250_v8 = vor.u32 %v2495_v60, %v2247_v62 }
  0xc6   : > { %v753_v7 = vadd.f32 %v752_v6, %v740_v2  ;;  %v2098_v2 = vor.u32 %v2457_v53, %v2095_v54  ;;  %v2346_v6 = vor.u32 %v2519_v58, %v2343_v59 }
  0xc7   : > { %1546 = vmatpush.bf16.msrb.mxu3 %v2210_v11  ;;  %v2335_v11 = vld [vmem:[%s3812_s3 + $0x2e8] sm:$0xf0] }
  0xc8   : > { %v836_v15 = vmax.f32 %v753_v7, 0.0  ;;  %1535 = vmatpush.bf16.msrb.mxu1 %v2130_v12  ;;  %v754_v28 = vpop.f32.mrf.mxu3 }
  0xca   : > { %v3618_v18 = vpack.c.bf16 %v836_v15, %v836_v15  ;;  %v2239_v15 = vld [vmem:[%s3812_s3 + $0x228] sm:$0xf0] }
  0xcb   : > { %v741_v21 = vpop.f32.mrf.mxu1  ;;  %v778_v25 = vpop.f32.mrf.mxu2  ;;  %1547 = vmatpush.bf16.msrb.mxu3 %v2202_v31  ;;  %v2338_v31 = vor.u32 %v2517_v9, %v2335_v11 }
  0xcc   : > { %1462 = vmatmul.bf16.vlgmr.msrb.gmra.mxu0 %v3618_v18  ;;  %1536 = vmatpush.bf16.msrb.mxu1 %v2122_v22  ;;  %v2242_v21 = vor.u32 %v2493_v14, %v2239_v15  ;;  %v2515_v22 = vld [vmem:[%s3812_s3 + $0x2d4] sm:$0xf] }
  0xcd   : > { %1558 = vmatpush.bf16.msrb.mxu0 %v2282_v56  ;;  %v2473_v56 = vld [vmem:[%s3812_s3 + $0x184] sm:$0xf]  ;;  %v2330_v28 = vor.u32 %v2515_v22, %v2327_v23 }
  0xce   : > { %v2162_v26 = vor.u32 %v2473_v56, %v2159_v19 }
  0xcf   : > { %1548 = vmatpush.bf16.msrb.mxu3 %v2194_v33 }
  0xd0   : > { %1537 = vmatpush.bf16.msrb.mxu1 %v2114_v35  ;;  %v2223_v35 = vld [vmem:[%s3812_s3 + $0x208] sm:$0xf0] }
  0xd1   : > { %1559 = vmatpush.bf16.msrb.mxu0 %v2274_v29 }
  0xd2   : > { %v765_v41 = vpop.f32.mrf.mxu0 }
  0xd3   : > { %v766_v46 = vadd.f32 %v765_v41, %v305_v34  ;;  %v804_v47 = vpop.f32.mrf.mxu1  ;;  %v780_v51 = vpop.f32.mrf.mxu2  ;;  %1549 = vmatpush.bf16.msrb.mxu3 %v2186_v45  ;;  %v2489_v34 = vld [vmem:[%s3812_s3 + $0x204] sm:$0xf] }
  0xd4   : > { %1538 = vmatpush.bf16.msrb.mxu1 %v2106_v48  ;;  %v2226_v38 = vor.u32 %v2489_v34, %v2223_v35  ;;  %v2507_v51 = vld [vmem:[%s3812_s3 + $0x294] sm:$0xf] }
  0xd5   : > { %v779_v55 = vadd.f32 %v778_v25, %v766_v46  ;;  %1560 = vmatpush.bf16.msrb.mxu0 %v2266_v40  ;;  %v2491_v25 = vld [vmem:[%s3812_s3 + $0x214] sm:$0xf]  ;;  %v2311_v40 = vld [vmem:[%s3812_s3 + $0x2b8] sm:$0xf0]  ;;  %v2303_v46 = vld [vmem:[%s3812_s3 + $0x2a8] sm:$0xf0] }
  0xd6   : > { %v2314_v44 = vor.u32 %v2511_v39, %v2311_v40  ;;  %v2306_v49 = vor.u32 %v2509_v10, %v2303_v46 }
  0xd7   : > { %v837_v0 = vmax.f32 %v779_v55, 0.0  ;;  %1550 = vmatpush.bf16.msrb.mxu3 %v2178_v63  ;;  %v2287_v55 = vld [vmem:[%s3812_s3 + $0x288] sm:$0xf0] }
  0xd8   : > { %1539 = vmatpush.bf16.msrb.mxu1 %v2098_v2 }
  0xd9   : > { %v3695_v7 = vpack.c.bf16 %v837_v0, %v837_v0  ;;  %1561 = vmatpush.bf16.msrb.mxu0 %v2258_v57 }
  0xda   : > { %v791_v1 = vpop.f32.mrf.mxu3  ;;  %v767_v13 = vpop.f32.mrf.mxu0 }
  0xdb   : > { %v792_v5 = vadd.f32 %v791_v1, %v306_v52  ;;  %1475 = vmatmul.bf16.vlgmr.msrb.gmra.mxu2 %v3695_v7  ;;  %v806_v17 = vpop.f32.mrf.mxu1  ;;  %1551 = vmatpush.bf16.msrb.mxu3 %v2170_v16  ;;  %v2295_v52 = vld [vmem:[%s3812_s3 + $0x298] sm:$0xf0]  ;;  %v942_v1 = vld [vmem:[%s3813_s4] sm:$0x3] }
  0xdc   : > { %1514 = vmatmul.bf16.vlgmr.msra.gmra.mxu0 %v3557_v42  ;;  %1571 = vmatpush.bf16.msrb.mxu2 %v2346_v6  ;;  %v2231_v42 = vld [vmem:[%s3812_s3 + $0x218] sm:$0xf0]  ;;  %v2298_v54 = vor.u32 %v2507_v51, %v2295_v52  ;;  %v944_v4 = vperm.slane %v942_v1, 0 }
  0xdd   : > { %v805_v12 = vadd.f32 %v804_v47, %v792_v5  ;;  %1562 = vmatpush.bf16.msrb.mxu0 %v2250_v8  ;;  %v2234_v29 = vor.u32 %v2491_v25, %v2231_v42 }
  0xdf   : > { %v838_v20 = vmax.f32 %v805_v12, 0.0  ;;  %1552 = vmatpush.bf16.msrb.mxu3 %v2162_v26 }
  0xe0   : > { %1572 = vmatpush.bf16.msrb.mxu2 %v2338_v31 }
  0xe1   : > { %v844_v24 = vpack.c.bf16 %v838_v20, %v838_v20  ;;  %1563 = vmatpush.bf16.msrb.mxu0 %v2242_v21  ;;  %v945_v21 = vperm.slane %v942_v1, 1 }
  0xe2   : > { %v793_v27 = vpop.f32.mrf.mxu3  ;;  %v830_v33 = vpop.f32.mrf.mxu0 }
  0xe3   : > { %1488 = vmatmul.bf16.vlgmr.msra.gmra.mxu1 %v844_v24 }
  0xe4   : > { %1573 = vmatpush.bf16.msrb.mxu2 %v2330_v28 }
  0xe5   : > { %1564 = vmatpush.bf16.msrb.mxu0 %v2234_v29 }
  0xe8   : > { %1574 = vmatpush.bf16.msrb.mxu2 %v2322_v37 }
  0xe9   : > { %1565 = vmatpush.bf16.msrb.mxu0 %v2226_v38 }
  0xea   : > { %v817_v41 = vpop.f32.mrf.mxu2  ;;  %v832_v47 = vpop.f32.mrf.mxu0 }
  0xeb   : > { %v818_v43 = vadd.f32 %v817_v41, %v307_v36  ;;  %1527 = vmatmul.bf16.vlgmr.msra.gmra.mxu2 %v3585_v61  ;;  %v2505_v61 = vld [vmem:[%s3812_s3 + $0x284] sm:$0xf] }
  0xec   : > { %1566 = vmatmul.bf16.vlgmr.msrb.gmra.mxu0 %v844_v24  ;;  %1575 = vmatpush.bf16.msrb.mxu2 %v2314_v44  ;;  %v2290_v57 = vor.u32 %v2505_v61, %v2287_v55 }
  0xed   : > { %v831_v45 = vadd.f32 %v830_v33, %v818_v43 }
  0xef   : > { %v839_v48 = vmax.f32 %v831_v45, 0.0 }
  0xf0   : > { %1576 = vmatpush.bf16.msrb.mxu2 %v2306_v49 }
  0xf1   : > { %v845_v50 = vpack.c.bf16 %v839_v48, %v839_v48 }
  0xf2   : > { %v819_v53 = vpop.f32.mrf.mxu2 }
  0xf3   : > { %1501 = vmatmul.bf16.vlgmr.msra.gmra.mxu3 %v845_v50  ;;  %1540 = vmatmul.bf16.vlgmr.msrb.gmra.mxu1 %v3618_v18 }
  0xf4   : > { %1577 = vmatpush.bf16.msrb.mxu2 %v2298_v54 }
  0xf8   : > { %1578 = vmatpush.bf16.msrb.mxu2 %v2290_v57 }
  0xfb   : > { %1579 = vmatmul.bf16.vlgmr.msrb.gmra.mxu2 %v845_v50 }
 0x103   : > { %1553 = vmatmul.bf16.vlgmr.msrb.gmra.mxu3 %v3695_v7 }
 0x138   : > { %v1437_v58 = vpop.f32.mrf.mxu1 }
 0x139   : > { %v1438_v6 = vadd.f32 %v1437_v58, %v944_v4 }
 0x140   : > { %v1439_v59 = vpop.f32.mrf.mxu1 }
 0x145   : > { %v1450_v60 = vpop.f32.mrf.mxu3 }
 0x146   : > { %v1451_v9 = vadd.f32 %v1450_v60, %v1438_v6 }
 0x149   : > { %v1463_v18 = vpop.f32.mrf.mxu0 }
 0x14a   : > { %v1464_v12 = vadd.f32 %v1463_v18, %v1451_v9 }
 0x14d   : > { %v1452_v62 = vpop.f32.mrf.mxu3 }
 0x151   : > { %v1465_v63 = vpop.f32.mrf.mxu0 }
 0x159   : > { %v1515_v0 = vpop.f32.mrf.mxu0 }
 0x15a   : > { %v1516_v23 = vadd.f32 %v1515_v0, %v945_v21 }
 0x15e   : > { %v1476_v3 = vpop.f32.mrf.mxu2 }
 0x15f   : > { %v1477_v13 = vadd.f32 %v1476_v3, %v1464_v12 }
 0x160   : > { %v1489_v2 = vpop.f32.mrf.mxu1 }
 0x161   : > { %v1517_v5 = vpop.f32.mrf.mxu0  ;;  %v1490_v17 = vadd.f32 %v1489_v2, %v1477_v13 }
 0x166   : > { %v1478_v7 = vpop.f32.mrf.mxu2 }
 0x168   : > { %v1491_v8 = vpop.f32.mrf.mxu1 }
 0x169   : > { %v1567_v11 = vpop.f32.mrf.mxu0 }
 0x16e   : > { %v1528_v15 = vpop.f32.mrf.mxu2 }
 0x16f   : > { %v1529_v24 = vadd.f32 %v1528_v15, %v1516_v23 }
 0x170   : > { %v1541_v14 = vpop.f32.mrf.mxu1 }
 0x171   : > { %v1569_v16 = vpop.f32.mrf.mxu0  ;;  %v1542_v42 = vadd.f32 %v1541_v14, %v1529_v24 }
 0x176   : > { %v1502_v56 = vpop.f32.mrf.mxu3  ;;  %v1530_v31 = vpop.f32.mrf.mxu2 }
 0x177   : > { %v1503_v19 = vadd.f32 %v1502_v56, %v1490_v17 }
 0x178   : > { %v1543_v20 = vpop.f32.mrf.mxu1 }
 0x179   : > { %1584 = vst [vmem:[%s217_s17] sm:$0xff] %v1503_v19 }
 0x17e   : > { %v1504_v22 = vpop.f32.mrf.mxu3  ;;  %v1580_v25 = vpop.f32.mrf.mxu2 }
 0x186   : > { %v1554_v26 = vpop.f32.mrf.mxu3  ;;  %v1582_v29 = vpop.f32.mrf.mxu2 }
 0x187   : > { %v1555_v27 = vadd.f32 %v1554_v26, %v1542_v42 }
 0x189   : > { %v1568_v28 = vadd.f32 %v1567_v11, %v1555_v27 }
 0x18b   : > { %v1581_v30 = vadd.f32 %v1580_v25, %v1568_v28 }
 0x18d   : > { %1585 = vst.msk [vmem:[%s217_s17 + $0x8] sm:$0xff] %vm674_vm0, %v1581_v30 }
 0x18e   : > { %v1556_v32 = vpop.f32.mrf.mxu3 }
 0x18f   : > { %2588 = shalt.err (!%p2585_p3)
}
 0x190   : > { %2522 = dma.vmem_to_hbm [thread:$0]  (%p2693_p5), %s1601_s7, 256, %s1603_s25, %s1587_s22  }
 0x191 PF: > { %p2528_p4 = scmp.ge.s32.totalorder %s2623_s21, 2  ;;  %s1614_s15 = sand.u32 1, %s2611_s18  }
 0x192   : > { %s1615_s16 = scalar_lea.sflag [#allocation3], %s1614_s15 }
 0x193   : > { %p2525_p7 = pnand %p2528_p4, %p2697_p6 }
 0x195   : > { %p2526_p8 = pneg %p2525_p7 }
 0x197   : > { %2606 = dma.done.wait (%p2526_p8), %s1615_s16, 256  }
 0x198   : > { %2608 = vsyncadd (%p2526_p8), %s1615_s16, 4294967040  ;;  %p15_p9 = scmp.ge.s32.totalorder %s2680_s24, 4   ;;  %s3817_s18 = smov %s2615_s19 }
 0x199   : > { %s3818_s19 = smov %s2619_s20  ;;  %s3819_s20 = smov %s2691_s27 }
 0x19a   : > { %s3820_s21 = smov %s2680_s24  ;;  %17 = sbr.rel (!%p15_p9) target bundleno = 3 (0x3), region = 75 }
 0x19f   :  { %1621 = vsyncpa [#allocation3], 1 }
 0x1a0   :  { %1623 = vsyncpa [#allocation3 + $0x1], 1 }

</bundles_post_ra>
